<compile_context>
chip_gen: v7x
topology: tpu7x:2x2x1
jax: 0.10.0
libtpu: 0.0.40
codegen_flags: <defaults>
</compile_context>

<pallas_src>
import functools
import math

import jax
import jax.numpy as jnp
from jax import lax
from jax.experimental import pallas as pl
from jax.experimental.pallas import tpu as pltpu

_EPS = 1e-12            # F.normalize eps (clamp_min on the norm)
_EPS_SQ = _EPS * _EPS   # max(sqrt(ss), eps) == sqrt(max(ss, eps^2)) in f32


def _round_up(v, m):
    return ((v + m - 1) // m) * m


def _choose_tiles(batch, classes, d_pad):
    """Pick (tb, tc): 8-aligned batch tiles, lane-dense (128-multiple) class
    tiles, and a double-buffered working set that fits the 32 MiB scoped-VMEM
    default on every TPU generation (incl. v7x's 64 MiB physical VMEM)."""
    tb = 256 if batch >= 256 else max(8, _round_up(batch, 8))
    tc = 512 if classes >= 512 else max(128, _round_up(classes, 128))

    def step_bytes(tb_, tc_):
        # x tile + W tile + 2 output tiles + inv-norm tiles, f32, double-buffered.
        return 2 * 4 * (tb_ * d_pad + tc_ * d_pad + 2 * tb_ * tc_ + tb_ + tc_)

    budget = 24 * 1024 * 1024
    while step_bytes(tb, tc) > budget and tc > 128:
        tc = max(128, _round_up(tc // 2, 128))
    while step_bytes(tb, tc) > budget and tb > 8:
        tb = max(8, _round_up(tb // 2, 8))
    return tb, tc


def _pad2d(a, rows, cols):
    r, c = a.shape
    if r == rows and c == cols:
        return a
    return jnp.pad(a, ((0, rows - r), (0, cols - c)))


def _normalize_and_matmul(x_ref, w_ref, ix_ref, iw_ref, mm_dtype):
    # Cheap VPU scales with precomputed inverse row norms (hidden under MXU).
    # Zero-padded rows stay exactly zero after the scale, so padded classes /
    # padded batch rows produce zero logits that are sliced off outside.
    xn = (x_ref[...].astype(jnp.float32) * ix_ref[...]).astype(mm_dtype)
    wn = (w_ref[...].astype(jnp.float32) * iw_ref[...]).astype(mm_dtype)
    # Contract the shared feature axis of both operands directly: no wn.T
    # materialization / XLU transpose before the MXU push.
    return lax.dot_general(
        xn, wn,
        dimension_numbers=(((1,), (1,)), ((), ())),
        preferred_element_type=jnp.float32)


def _train_kernel(sigma_ref, x_ref, w_ref, ix_ref, iw_ref,
                  ws_ref, wo_ref, *, mm_dtype):
    out = _normalize_and_matmul(x_ref, w_ref, ix_ref, iw_ref, mm_dtype)
    wo_ref[...] = out.astype(wo_ref.dtype)
    ws_ref[...] = (sigma_ref[0] * out).astype(ws_ref.dtype)


def _eval_kernel(sigma_ref, x_ref, w_ref, ix_ref, iw_ref,
                 ws_ref, *, mm_dtype):
    out = _normalize_and_matmul(x_ref, w_ref, ix_ref, iw_ref, mm_dtype)
    ws_ref[...] = (sigma_ref[0] * out).astype(ws_ref.dtype)


@functools.partial(jax.jit, static_argnames=("training",))
def cosine_linear_forward(x, weight, sigma=None, training=True):
    """x: (B, in_features), weight: (out_features, in_features),
    sigma: (1,) array or None (matches the sigma=False module config)."""
    B, D = x.shape
    C, D_w = weight.shape
    assert D == D_w

    if sigma is None:
        sigma_arr = jnp.ones((1,), dtype=jnp.float32)       # out_s == out
    else:
        sigma_arr = sigma.reshape((1,)).astype(jnp.float32)

    d_pad = max(128, _round_up(D, 128))
    tb, tc = _choose_tiles(B, C, d_pad)
    b_pad = _round_up(max(B, tb), tb)
    c_pad = _round_up(max(C, tc), tc)

    xp = _pad2d(x, b_pad, d_pad)
    wp = _pad2d(weight, c_pad, d_pad)

    # Hoisted inverse L2 row norms: one O(B*D + C*D) pass per call (tiny XLA
    # fusion) instead of re-reducing the weight rows for every batch tile
    # inside the matmul grid.  max(ss, eps^2) + rsqrt == 1 / max(||row||, eps).
    inv_x = lax.rsqrt(jnp.maximum(
        jnp.sum(xp.astype(jnp.float32) ** 2, axis=1, keepdims=True), _EPS_SQ))
    inv_w = lax.rsqrt(jnp.maximum(
        jnp.sum(wp.astype(jnp.float32) ** 2, axis=1, keepdims=True), _EPS_SQ))

    if x.dtype == jnp.bfloat16 and weight.dtype == jnp.bfloat16:
        mm_dtype = jnp.bfloat16      # bf16 operands into the MXU, f32 accumulate
    else:
        mm_dtype = jnp.float32

    nb = b_pad // tb
    nc = c_pad // tc
    out_dtype = x.dtype

    in_specs = [
        pl.BlockSpec(memory_space=pltpu.SMEM),              # sigma scalar (1,)
        pl.BlockSpec((tb, d_pad), lambda b, c: (b, 0)),     # x tile
        pl.BlockSpec((tc, d_pad), lambda b, c: (c, 0)),     # W tile
        pl.BlockSpec((tb, 1), lambda b, c: (b, 0)),         # 1/||x_row||
        pl.BlockSpec((tc, 1), lambda b, c: (c, 0)),         # 1/||w_row||
    ]
    out_block = pl.BlockSpec((tb, tc), lambda b, c: (b, c))
    compiler_params = pltpu.CompilerParams(
        dimension_semantics=("parallel", "parallel"))

    if training:
        ws_p, wo_p = pl.pallas_call(
            functools.partial(_train_kernel, mm_dtype=mm_dtype),
            out_shape=(
                jax.ShapeDtypeStruct((b_pad, c_pad), out_dtype),
                jax.ShapeDtypeStruct((b_pad, c_pad), out_dtype),
            ),
            grid_spec=pltpu.PrefetchScalarGridSpec(
                num_scalar_prefetch=0,
                grid=(nb, nc),
                in_specs=in_specs,
                out_specs=[out_block, out_block],
            ),
            compiler_params=compiler_params,
        )(sigma_arr, xp, wp, inv_x, inv_w)
        return {"wsigma": ws_p[:B, :C], "wosigma": wo_p[:B, :C]}

    # Eval mode: single output -> half the output HBM writeback / store slots.
    ws_p = pl.pallas_call(
        functools.partial(_eval_kernel, mm_dtype=mm_dtype),
        out_shape=jax.ShapeDtypeStruct((b_pad, c_pad), out_dtype),
        grid_spec=pltpu.PrefetchScalarGridSpec(
            num_scalar_prefetch=0,
            grid=(nb, nc),
            in_specs=in_specs,
            out_specs=out_block,
        ),
        compiler_params=compiler_params,
    )(sigma_arr, xp, wp, inv_x, inv_w)
    return ws_p[:B, :C]


def init_cosine_linear_params(key, in_features, out_features, sigma=True):
    """Deterministic re-implementation of CosineLinear.reset_parameters()."""
    stdv = 1.0 / math.sqrt(in_features)
    weight = jax.random.uniform(
        key, (out_features, in_features), dtype=jnp.float32,
        minval=-stdv, maxval=stdv)
    sigma_p = jnp.ones((1,), dtype=jnp.float32) if sigma else None
    return weight, sigma_p


if __name__ == "__main__":
    key = jax.random.PRNGKey(0)
    k_w, k_x, k_w2, k_x2 = jax.random.split(key, 4)

    def reference(x, w, s):
        xn = x / jnp.maximum(jnp.linalg.norm(x, axis=1, keepdims=True), _EPS)
        wn = w / jnp.maximum(jnp.linalg.norm(w, axis=1, keepdims=True), _EPS)
        out = jnp.matmul(xn, wn.T, precision=lax.Precision.HIGHEST)
        return out, (s[0] * out if s is not None else out)

    # Small shapes consistent with the module (classifier head).
    batch, in_features, out_features = 8, 32, 16
    weight, sigma = init_cosine_linear_params(k_w, in_features, out_features)
    x = jax.random.normal(k_x, (batch, in_features), dtype=jnp.float32)

    out = cosine_linear_forward(x, weight, sigma, training=True)
    jax.block_until_ready(out)
    ref_wo, ref_ws = reference(x, weight, sigma)
    assert jnp.allclose(out["wosigma"], ref_wo, atol=1e-5)
    assert jnp.allclose(out["wsigma"], ref_ws, atol=1e-5)

    out_eval = cosine_linear_forward(x, weight, sigma, training=False)
    jax.block_until_ready(out_eval)
    assert jnp.allclose(out_eval, ref_ws, atol=1e-5)

    # sigma=None configuration (register_parameter('sigma', None) path).
    out_nosig = cosine_linear_forward(x, weight, None, training=False)
    jax.block_until_ready(out_nosig)
    assert jnp.allclose(out_nosig, ref_wo, atol=1e-5)

    # Unaligned, multi-tile case: exercises (B, C) tiling, zero padding of
    # batch / class / feature dims and the grid=(1, 2) pipelined path.
    b2, d2, c2 = 16, 72, 600
    w2, s2 = init_cosine_linear_params(k_w2, d2, c2)
    x2 = jax.random.normal(k_x2, (b2, d2), dtype=jnp.float32)
    out2 = cosine_linear_forward(x2, w2, s2, training=True)
    jax.block_until_ready(out2)
    ref2_wo, ref2_ws = reference(x2, w2, s2)
    assert jnp.allclose(out2["wosigma"], ref2_wo, atol=1e-5)
    assert jnp.allclose(out2["wsigma"], ref2_ws, atol=1e-5)

    print("KERNEL_OK")
</pallas_src>

<mosaic_0001>
module attributes {stable_mosaic.version = 11 : i64} {
  func.func @_train_kernel(%arg0: i32, %arg1: i32, %arg2: memref<1xf32, #tpu.memory_space<smem>>, %arg3: memref<8x128xf32, #tpu.memory_space<vmem>>, %arg4: memref<128x128xf32, #tpu.memory_space<vmem>>, %arg5: memref<8x1xf32, #tpu.memory_space<vmem>>, %arg6: memref<128x1xf32, #tpu.memory_space<vmem>>, %arg7: memref<8x128xf32, #tpu.memory_space<vmem>>, %arg8: memref<8x128xf32, #tpu.memory_space<vmem>>) attributes {dimension_semantics = [#tpu.dimension_semantics<parallel>, #tpu.dimension_semantics<parallel>], iteration_bounds = array<i64: 1, 1>, scalar_prefetch = 0 : i64, scratch_operands = 0 : i64, tpu.core_type = #tpu.core_type<tc>, window_params = [{transform_indices = @transform_0, window_bounds = array<i64: 1>}, {transform_indices = @transform_1, window_bounds = array<i64: 8, 128>}, {transform_indices = @transform_2, window_bounds = array<i64: 128, 128>}, {transform_indices = @transform_3, window_bounds = array<i64: 8, 1>}, {transform_indices = @transform_4, window_bounds = array<i64: 128, 1>}, {transform_indices = @transform_5, window_bounds = array<i64: 8, 128>}, {transform_indices = @transform_6, window_bounds = array<i64: 8, 128>}]} {
    %c0 = arith.constant 0 : index
    %c0_0 = arith.constant 0 : index
    %0 = vector.load %arg3[%c0, %c0_0] : memref<8x128xf32, #tpu.memory_space<vmem>>, vector<8x128xf32>
    %c0_1 = arith.constant 0 : index
    %c0_2 = arith.constant 0 : index
    %1 = vector.load %arg5[%c0_1, %c0_2] : memref<8x1xf32, #tpu.memory_space<vmem>>, vector<8x1xf32>
    %2 = vector.broadcast %1 : vector<8x1xf32> to vector<8x128xf32>
    %3 = arith.mulf %0, %2 : vector<8x128xf32>
    %c0_3 = arith.constant 0 : index
    %c0_4 = arith.constant 0 : index
    %4 = vector.load %arg4[%c0_3, %c0_4] : memref<128x128xf32, #tpu.memory_space<vmem>>, vector<128x128xf32>
    %c0_5 = arith.constant 0 : index
    %c0_6 = arith.constant 0 : index
    %5 = vector.load %arg6[%c0_5, %c0_6] : memref<128x1xf32, #tpu.memory_space<vmem>>, vector<128x1xf32>
    %6 = vector.broadcast %5 : vector<128x1xf32> to vector<128x128xf32>
    %7 = arith.mulf %4, %6 : vector<128x128xf32>
    %cst = arith.constant dense<0.000000e+00> : vector<8x128xf32>
    %8 = tpu.matmul %3, %7, %cst {dimension_numbers = #tpu.dot_dimension_numbers<[1], [1], [0], [0], [0, 0, 1, 0], [], []>} : vector<8x128xf32>, vector<128x128xf32>, vector<8x128xf32> -> vector<8x128xf32>
    %c0_7 = arith.constant 0 : index
    %c0_8 = arith.constant 0 : index
    %9 = vector.load %arg8[%c0_7, %c0_8] : memref<8x128xf32, #tpu.memory_space<vmem>>, vector<8x128xf32>
    tpu.vector_store %arg8[%c0_7, %c0_8], %8 {strides = array<i32>} : memref<8x128xf32, #tpu.memory_space<vmem>>, vector<8x128xf32>,
    %c0_9 = arith.constant 0 : index
    %10 = memref.load %arg2[%c0_9] : memref<1xf32, #tpu.memory_space<smem>>
    %11 = vector.broadcast %10 : f32 to vector<8x128xf32>
    %12 = arith.mulf %11, %8 : vector<8x128xf32>
    %c0_10 = arith.constant 0 : index
    %c0_11 = arith.constant 0 : index
    %13 = vector.load %arg7[%c0_10, %c0_11] : memref<8x128xf32, #tpu.memory_space<vmem>>, vector<8x128xf32>
    tpu.vector_store %arg7[%c0_10, %c0_11], %12 {strides = array<i32>} : memref<8x128xf32, #tpu.memory_space<vmem>>, vector<8x128xf32>,
    return
  }
  func.func @transform_0(%arg0: i32, %arg1: i32) -> i32 {
    %c0_i32 = arith.constant 0 : i32
    %c0_i32_0 = arith.constant 0 : i32
    return %c0_i32 : i32
  }
  func.func @transform_1(%arg0: i32, %arg1: i32) -> (i32, i32) {
    %c0_i32 = arith.constant 0 : i32
    %c0_i32_0 = arith.constant 0 : i32
    return %arg0, %c0_i32 : i32, i32
  }
  func.func @transform_2(%arg0: i32, %arg1: i32) -> (i32, i32) {
    %c0_i32 = arith.constant 0 : i32
    %c0_i32_0 = arith.constant 0 : i32
    return %arg1, %c0_i32 : i32, i32
  }
  func.func @transform_3(%arg0: i32, %arg1: i32) -> (i32, i32) {
    %c0_i32 = arith.constant 0 : i32
    %c0_i32_0 = arith.constant 0 : i32
    return %arg0, %c0_i32 : i32, i32
  }
  func.func @transform_4(%arg0: i32, %arg1: i32) -> (i32, i32) {
    %c0_i32 = arith.constant 0 : i32
    %c0_i32_0 = arith.constant 0 : i32
    return %arg1, %c0_i32 : i32, i32
  }
  func.func @transform_5(%arg0: i32, %arg1: i32) -> (i32, i32) {
    %c0_i32 = arith.constant 0 : i32
    return %arg0, %arg1 : i32, i32
  }
  func.func @transform_6(%arg0: i32, %arg1: i32) -> (i32, i32) {
    %c0_i32 = arith.constant 0 : i32
    return %arg0, %arg1 : i32, i32
  }
}

</mosaic_0001>

<bundles_post_ra>
// kernel: cosine_linear_forward.1
= control target key start
LH: loop header
LB: loop body
LE: loop exit
PB: predicated region body
PF: predicated region fallthrough
CT: control target
= control target key end

     0   :  { %13 = vsyncpa [#allocation4], 0  ;;  %v396_v2 = vmov 0   ;;  %s574_s0 = inlined_call_operand.<no memory space> [shape: f32[1], index: 0, kind: input, shape index: {}]   ;;  %s575_s1 = inlined_call_operand.vmem [shape: f32[8,128], index: 1, kind: input, shape index: {}]   ;;  %s576_s2 = inlined_call_operand.vmem [shape: f32[128,128], index: 2, kind: input, shape index: {}]   ;;  %s577_s3 = inlined_call_operand.vmem [shape: f32[8,1], index: 3, kind: input, shape index: {}]   ;;  %s578_s4 = inlined_call_operand.vmem [shape: f32[128,1], index: 4, kind: input, shape index: {}]   ;;  %s579_s5 = inlined_call_operand.hbm [shape: f32[8,128], index: 5, kind: output, shape index: {0}]   ;;  %s580_s6 = inlined_call_operand.hbm [shape: f32[8,128], index: 6, kind: output, shape index: {1}]  }
   0x1   :  { %v51_v0 = vld [vmem:[%s578_s4 + $0x10] sm:$0xff]  ;;  %v49_v1 = vld [vmem:[%s578_s4] sm:$0xff]  ;;  %347 = vset.pattern.permute.xlu1 %v396_v2  ;;  %346 = vset.pattern.permute.xlu0 %v396_v2  ;;  %v52_v3 = vld [vmem:[%s578_s4 + $0x18] sm:$0xff] }
   0x2   :  { %77 = vperm.xlu1 %347, %v51_v0   ;;  %67 = vperm.xlu0 %346, %v49_v1   ;;  %v50_v4 = vld [vmem:[%s578_s4 + $0x8] sm:$0xff]  ;;  %v53_v6 = vld [vmem:[%s578_s4 + $0x20] sm:$0xff] }
   0x3   :  { %v54_v5 = vld [vmem:[%s578_s4 + $0x28] sm:$0xff] }
   0x6   :  { %82 = vperm.xlu1 %347, %v52_v3   ;;  %72 = vperm.xlu0 %346, %v50_v4  }
   0x7   :  { %14 = vsyncpa [#allocation6], 0  ;;  %v397_v7 = vmov 0.0|0.0   ;;  %v56_v8 = vld [vmem:[%s578_s4 + $0x38] sm:$0xff]  ;;  %v55_v9 = vld [vmem:[%s578_s4 + $0x30] sm:$0xff]  ;;  %vm398_vm0 = vmmov 0  }
   0x8   :  { %316 = vmatprep.subr.bf16.mxu0 %v397_v7  ;;  %v58_v10 = vld [vmem:[%s578_s4 + $0x48] sm:$0xff]  ;;  %v57_v11 = vld [vmem:[%s578_s4 + $0x40] sm:$0xff]  ;;  %v60_v12 = vld [vmem:[%s578_s4 + $0x58] sm:$0xff]  ;;  %v399_v19 = vmov 0.0   ;;  %s400_s13 = smov [#allocation5]  }
   0x9   :  { %v59_v13 = vld [vmem:[%s578_s4 + $0x50] sm:$0xff]  ;;  %v62_v14 = vld [vmem:[%s578_s4 + $0x68] sm:$0xff]  ;;  %v61_v15 = vld [vmem:[%s578_s4 + $0x60] sm:$0xff]  ;;  %313 = vmatprep.mubr.msk.f32.mxu0 %vm398_vm0, %v399_v19  ;;  %s252_s14 = sshll.u32 %s400_s13, 4  ;;  %s253_s14 = int_to_ptr.vmem [resolvable:$true] %s252_s14 }
   0xa   :  { %92 = vperm.xlu1 %347, %v54_v5   ;;  %87 = vperm.xlu0 %346, %v53_v6   ;;  %v64_v16 = vld [vmem:[%s578_s4 + $0x78] sm:$0xff]  ;;  %v63_v17 = vld [vmem:[%s578_s4 + $0x70] sm:$0xff]  ;;  %v26_v18 = vld [vmem:[%s577_s3] sm:$0xff]  ;;  %s348_s18 = scalar_lea.vmem %s253_s14, 128  ;;  %p353_p1 = scmp.lt.s32.totalorder %s253_s14, %s253_s14 }
   0xb   :  { %v33_v21 = vld [vmem:[%s576_s2] sm:$0xff]  ;;  %v34_v22 = vld [vmem:[%s576_s2 + $0x8] sm:$0xff]  ;;  %v35_v28 = vld [vmem:[%s576_s2 + $0x10] sm:$0xff]  ;;  %p349_p0 = scmp.ne.s32.totalorder %s253_s14, %s348_s18  ;;  %p354_p2 = scmp.lt.s32.totalorder %s348_s18, %s348_s18 }
   0xc   :  { %v36_v29 = vld [vmem:[%s576_s2 + $0x18] sm:$0xff]  ;;  %v38_v34 = vld [vmem:[%s576_s2 + $0x28] sm:$0xff]  ;;  %v37_v36 = vld [vmem:[%s576_s2 + $0x20] sm:$0xff] }
   0xd   :  { %v40_v41 = vld [vmem:[%s576_s2 + $0x38] sm:$0xff]  ;;  %v39_v43 = vld [vmem:[%s576_s2 + $0x30] sm:$0xff]  ;;  %v42_v48 = vld [vmem:[%s576_s2 + $0x48] sm:$0xff]  ;;  %p355_p3 = por %p354_p2, %p353_p1 }
   0xe   :  { %102 = vperm.xlu1 %347, %v56_v8   ;;  %97 = vperm.xlu0 %346, %v55_v9   ;;  %v41_v50 = vld [vmem:[%s576_s2 + $0x40] sm:$0xff]  ;;  %v44_v55 = vld [vmem:[%s576_s2 + $0x58] sm:$0xff]  ;;  %v43_v57 = vld [vmem:[%s576_s2 + $0x50] sm:$0xff] }
   0xf   :  { %v46_v62 = vld [vmem:[%s576_s2 + $0x68] sm:$0xff]  ;;  %v45_v0 = vld [vmem:[%s576_s2 + $0x60] sm:$0xff]  ;;  %v48_v5 = vld [vmem:[%s576_s2 + $0x78] sm:$0xff]  ;;  %p356_p4 = pnand %p355_p3, %p349_p0 }
  0x10   :  { %v47_v8 = vld [vmem:[%s576_s2 + $0x70] sm:$0xff]  ;;  %s401_s2 = smov [#allocation3]  }
  0x11   :  { %s242_s17 = sshll.u32 %s401_s2, 4  ;;  %s243_s17 = int_to_ptr.vmem [resolvable:$true] %s242_s17 }
  0x12   :  { %112 = vperm.xlu1 %347, %v58_v10   ;;  %107 = vperm.xlu0 %346, %v57_v11  }
  0x16   :  { %122 = vperm.xlu1 %347, %v60_v12   ;;  %117 = vperm.xlu0 %346, %v59_v13  }
  0x1a   :  { %132 = vperm.xlu1 %347, %v62_v14   ;;  %127 = vperm.xlu0 %346, %v61_v15   ;;  %v25_v14 = vld [vmem:[%s575_s1] sm:$0xff] }
  0x1e   :  { %142 = vperm.xlu1 %347, %v64_v16   ;;  %137 = vperm.xlu0 %346, %v63_v17   ;;  %v233_v16 = vstv %s574_s0 }
  0x22   :  { %29 = vperm.xlu0 %346, %v26_v18  }
  0x81   :  { %v68_v20 = vpop.permute.xlu0 %67  ;;  %v78_v23 = vpop.permute.xlu1 %77 }
  0x82   :  { %v145_v25 = vmul.f32 %v68_v20, %v33_v21  ;;  %v147_v31 = vmul.f32 %v78_v23, %v35_v28 }
  0x85   :  { %v73_v24 = vpop.permute.xlu0 %72  ;;  %v83_v30 = vpop.permute.xlu1 %82 }
  0x86   :  { %v146_v26 = vmul.f32 %v73_v24, %v34_v22  ;;  %v148_v32 = vmul.f32 %v83_v30, %v36_v29 }
  0x88   :  { %v317_v27 = vpack.c.bf16 %v146_v26, %v145_v25  ;;  %v320_v33 = vpack.c.bf16 %v148_v32, %v147_v31 }
  0x89   :  { %v93_v35 = vpop.permute.xlu1 %92  ;;  %v88_v37 = vpop.permute.xlu0 %87 }
  0x8a   :  { %318 = vmatpush3.bf16.xpose.msra.mxu0 %v317_v27  ;;  %v150_v38 = vmul.f32 %v93_v35, %v38_v34  ;;  %v149_v39 = vmul.f32 %v88_v37, %v37_v36 }
  0x8b   :  { %319 = vmatprep.subr.bf16.mxu0 %v397_v7 }
  0x8c   :  { %v323_v40 = vpack.c.bf16 %v150_v38, %v149_v39 }
  0x8d   :  { %v103_v42 = vpop.permute.xlu1 %102  ;;  %v98_v44 = vpop.permute.xlu0 %97 }
  0x8e   :  { %v152_v45 = vmul.f32 %v103_v42, %v40_v41  ;;  %v151_v46 = vmul.f32 %v98_v44, %v39_v43 }
  0x90   :  { %v326_v47 = vpack.c.bf16 %v152_v45, %v151_v46 }
  0x91   :  { %v113_v49 = vpop.permute.xlu1 %112  ;;  %v108_v51 = vpop.permute.xlu0 %107 }
  0x92   :  { %321 = vmatpush3.bf16.xpose.msra.mxu0 %v320_v33  ;;  %v154_v52 = vmul.f32 %v113_v49, %v42_v48  ;;  %v153_v53 = vmul.f32 %v108_v51, %v41_v50 }
  0x93   :  { %322 = vmatprep.subr.bf16.mxu0 %v397_v7 }
  0x94   :  { %v329_v54 = vpack.c.bf16 %v154_v52, %v153_v53 }
  0x95   :  { %v123_v56 = vpop.permute.xlu1 %122  ;;  %v118_v58 = vpop.permute.xlu0 %117 }
  0x96   :  { %v156_v59 = vmul.f32 %v123_v56, %v44_v55  ;;  %v155_v60 = vmul.f32 %v118_v58, %v43_v57 }
  0x98   :  { %v332_v61 = vpack.c.bf16 %v156_v59, %v155_v60 }
  0x99   :  { %v133_v63 = vpop.permute.xlu1 %132  ;;  %v128_v1 = vpop.permute.xlu0 %127 }
  0x9a   :  { %324 = vmatpush3.bf16.xpose.msra.mxu0 %v323_v40  ;;  %v158_v2 = vmul.f32 %v133_v63, %v46_v62  ;;  %v157_v3 = vmul.f32 %v128_v1, %v45_v0 }
  0x9b   :  { %325 = vmatprep.subr.bf16.mxu0 %v397_v7 }
  0x9c   :  { %v335_v4 = vpack.c.bf16 %v158_v2, %v157_v3 }
  0x9d   :  { %v143_v6 = vpop.permute.xlu1 %142  ;;  %v138_v9 = vpop.permute.xlu0 %137 }
  0x9e   :  { %v160_v10 = vmul.f32 %v143_v6, %v48_v5  ;;  %v159_v11 = vmul.f32 %v138_v9, %v47_v8 }
  0xa0   :  { %v338_v12 = vpack.c.bf16 %v160_v10, %v159_v11 }
  0xa1   :  { %v30_v13 = vpop.permute.xlu0 %29 }
  0xa2   :  { %327 = vmatpush3.bf16.xpose.msra.mxu0 %v326_v47  ;;  %v32_v15 = vmul.f32 %v30_v13, %v25_v14 }
  0xa3   :  { %328 = vmatprep.subr.bf16.mxu0 %v397_v7 }
  0xaa   :  { %330 = vmatpush3.bf16.xpose.msra.mxu0 %v329_v54 }
  0xab   :  { %331 = vmatprep.subr.bf16.mxu0 %v397_v7 }
  0xb2   :  { %333 = vmatpush3.bf16.xpose.msra.mxu0 %v332_v61 }
  0xb3   :  { %334 = vmatprep.subr.bf16.mxu0 %v397_v7 }
  0xba   :  { %336 = vmatpush3.bf16.xpose.msra.mxu0 %v335_v4 }
  0xbb   :  { %337 = vmatprep.subr.bf16.mxu0 %v397_v7 }
  0xc2   :  { %339 = vmatpush3.bf16.xpose.msra.mxu0 %v338_v12 }
  0xc9   :  { %314 = vmatmul.mubr.f32.vlgmr.msra.gmra.mrb[0].mxu0 %v32_v15 }
 0x19c   :  { %v227_v7 = vpop.f32.mrb[0].mxu0 }
 0x19d   :  { %231 = vst [vmem:[#allocation5] sm:$0xff] %v227_v7  ;;  %v315_v17 = vpop.f32.mrb[1].mxu0  ;;  %v234_v18 = vmul.f32 %v233_v16, %v227_v7 }
 0x19e   :  { %359 = shalt.err (!%p356_p4)
}
 0x19f   :  { %s360_s20 = scalar_lea.hbm %s580_s6, 128 }
 0x1a0   :  { %p361_p5 = scmp.ne.s32.totalorder %s580_s6, %s360_s20  ;;  %p364_p6 = scmp.lt.u32.totalorder %s360_s20, %s580_s6 }
 0x1a2   :  { %p366_p7 = pnand %p364_p6, %p361_p5 }
 0x1a4   :  { %369 = shalt.err (!%p366_p7)
}
 0x1a5   :  { %255 = dma.vmem_to_hbm [thread:$0]  %s253_s14, 128, %s580_s6, [#allocation6]   ;;  %235 = vst [vmem:[#allocation3] sm:$0xff] %v234_v18 }
 0x1a6   :  { %s370_s26 = scalar_lea.vmem %s243_s17, 128  ;;  %p375_p9 = scmp.lt.s32.totalorder %s243_s17, %s243_s17 }
 0x1a7   :  { %p371_p8 = scmp.ne.s32.totalorder %s243_s17, %s370_s26  ;;  %p376_p10 = scmp.lt.s32.totalorder %s370_s26, %s370_s26 }
 0x1a9   :  { %p377_p11 = por %p376_p10, %p375_p9 }
 0x1ab   :  { %p378_p12 = pnand %p377_p11, %p371_p8 }
 0x1ad   :  { %381 = shalt.err (!%p378_p12)
}
 0x1ae   :  { %s382_s29 = scalar_lea.hbm %s579_s5, 128 }
 0x1af   :  { %p383_p13 = scmp.ne.s32.totalorder %s579_s5, %s382_s29  ;;  %p386_p0 = scmp.lt.u32.totalorder %s382_s29, %s579_s5 }
 0x1b1   :  { %p388_p1 = pnand %p386_p0, %p383_p13 }
 0x1b3   :  { %391 = shalt.err (!%p388_p1)
}
 0x1b4   :  { %245 = dma.vmem_to_hbm [thread:$0]  %s243_s17, 128, %s579_s5, [#allocation4]  }
 0x1b5   :  { %392 = dma.done.wait [#allocation4], 128  }
 0x1b6   :  { %393 = vsyncadd [#allocation4], 4294967168 }
 0x1b7   :  { %394 = dma.done.wait [#allocation6], 128  }
 0x1b8   :  { %395 = vsyncadd [#allocation6], 4294967168 }
 0x1b9   :  { %262 = vsyncpa [#allocation4], 1 }
 0x1ba   :  { %263 = vsyncpa [#allocation6], 1 }

</bundles_post_ra>
